<compile_context>
chip_gen: v5e
topology: v5e:2x2
jax: 0.10.0
libtpu: 0.0.40
codegen_flags: <defaults>
</compile_context>

<pallas_src>
import functools

import jax
import jax.numpy as jnp
import numpy as np
from jax.experimental import pallas as pl
from jax.experimental.pallas import tpu as pltpu


# ----------------------------------------------------------------------------
# Fused MHA kernel: one grid step = (batch tile, q tile) x ALL heads.
# ----------------------------------------------------------------------------
def _fused_mha_kernel(q_ref, k_ref, v_ref, mask_ref,
                      wq_ref, bq_ref, wk_ref, bk_ref, wv_ref, bv_ref,
                      wfc_ref, bfc_ref, g_ref, beta_ref,
                      o_ref, a_ref, ctx_ref,
                      *, n_head, d_k, d_v, inv_scale, eps):
    bt, lq, dm = q_ref.shape
    _, lk, _ = k_ref.shape

    # ---- full-width Q/K/V projections (one MXU matmul each, N = n_head*d_k).
    q_res = q_ref[...]                                    # f32, reused as residual
    xq = q_res.reshape(bt * lq, dm).astype(jnp.bfloat16)  # cast once per step
    xk = k_ref[...].reshape(bt * lk, dm)                  # already bf16
    xv = v_ref[...].reshape(bt * lk, dm)

    qh = (jnp.dot(xq, wq_ref[...], preferred_element_type=jnp.float32)
          + bq_ref[...]) * inv_scale                      # 1/sqrt(d_k) folded into Q
    kh = jnp.dot(xk, wk_ref[...], preferred_element_type=jnp.float32) + bk_ref[...]
    vh = jnp.dot(xv, wv_ref[...], preferred_element_type=jnp.float32) + bv_ref[...]
    qh = qh.astype(jnp.bfloat16)
    kh = kh.astype(jnp.bfloat16)
    vh = vh.astype(jnp.bfloat16)

    # Mask shared across heads (int8, nonzero == masked).  Hoisted out of loop.
    masked = mask_ref[...].astype(jnp.float32) != 0.0

    # ---- per-head attention (short static loop, unrolled at trace time).
    for h in range(n_head):
        q_h = qh[:, h * d_k:(h + 1) * d_k].reshape(bt, lq, d_k)
        k_h = kh[:, h * d_k:(h + 1) * d_k].reshape(bt, lk, d_k)
        v_h = vh[:, h * d_v:(h + 1) * d_v].reshape(bt, lk, d_v)

        s = jnp.einsum('bqd,bkd->bqk', q_h, k_h,
                       preferred_element_type=jnp.float32)
        s = jnp.where(masked, -1e30, s)                   # finite fill: no NaN rows
        m = jnp.max(s, axis=-1, keepdims=True)
        e = jnp.exp(s - m)                                # f32 exp (safe on v5e)
        p = e * pl.reciprocal(jnp.sum(e, axis=-1, keepdims=True), approx=True)
        p = p.astype(jnp.bfloat16)
        a_ref[h] = p                                      # bf16 attn writeback

        ctx_h = jnp.einsum('bqk,bkd->bqd', p, v_h,
                           preferred_element_type=jnp.float32)
        ctx_ref[:, h * d_v:(h + 1) * d_v] = (
            ctx_h.reshape(bt * lq, d_v).astype(jnp.bfloat16))

    # ---- ONE fc matmul (K = n_head*d_v) + bias + residual + LayerNorm.
    y = jnp.dot(ctx_ref[...], wfc_ref[...], preferred_element_type=jnp.float32)
    y = y.reshape(bt, lq, dm) + bfc_ref[...] + q_res
    # TODO(synk): dropout(p=0.1) is identity in eval mode; training-mode RNG
    # dropout is not reproduced here.
    mean = jnp.mean(y, axis=-1, keepdims=True)
    var = jnp.mean((y - mean) ** 2, axis=-1, keepdims=True)
    o_ref[...] = ((y - mean) * jax.lax.rsqrt(var + eps)) * g_ref[...] + beta_ref[...]


# ----------------------------------------------------------------------------
# VMEM-aware tile selection
# ----------------------------------------------------------------------------
def _step_vmem_bytes(bt, lqt, lk, dm, n_head, d_k, d_v):
    """Rough per-grid-step VMEM footprint (pipelined blocks double-buffered)."""
    h_dk, h_dv = n_head * d_k, n_head * d_v
    blocks = (bt * lqt * dm * 4              # q block (f32)
              + 2 * bt * lk * dm * 2         # k, v blocks (bf16)
              + bt * lqt * lk * 1            # mask block (int8)
              + bt * lqt * dm * 4            # out block (f32)
              + n_head * bt * lqt * lk * 2)  # attn block (bf16)
    weights = (2 * (2 * dm * h_dk + dm * h_dv + h_dv * dm)
               + 4 * (2 * h_dk + h_dv + 3 * dm))
    interm = ((bt * lqt * h_dk + bt * lk * h_dk + bt * lk * h_dv) * 6  # projections
              + 4 * bt * lqt * lk * 4        # scores / exp / probs (live per head)
              + bt * lqt * h_dv * 2          # context scratch (bf16)
              + 2 * bt * lqt * dm * 4)       # y + LayerNorm temporaries
    return 2 * blocks + weights + interm


def _pick_tiles(B, Lq, Lk, Dm, n_head, d_k, d_v, budget):
    def fits(bt, lqt):
        return _step_vmem_bytes(bt, lqt, Lk, Dm, n_head, d_k, d_v) <= budget

    # q-tile candidates: full length first, then multiples of 32 that divide Lq
    # (multiple of 32 satisfies the (8,128)/packed-sublane tiling for all dtypes).
    lq_cands = [Lq] + sorted((t for t in range(32, Lq, 32) if Lq % t == 0),
                             reverse=True)
    # batch-tile candidates: prefer < B so the grid has >=2 steps (megacore /
    # v7x 2 TensorCores), largest first to keep a big MXU M dimension.
    divs = sorted((bt for bt in range(1, B + 1) if B % bt == 0), reverse=True)
    bt_cands = [bt for bt in divs if bt < B] + [B]

    for bt in bt_cands:
        for lqt in lq_cands:
            if fits(bt, lqt):
                # If everything fits in one step, still split the q axis so a
                # second TensorCore (v7x) has work to do.
                if (B // bt) * (Lq // lqt) == 1 and Lq % 64 == 0:
                    lqt = Lq // 2
                return bt, lqt
    return 1, lq_cands[-1]   # nothing fits the budget: smallest tile, may spill


# ----------------------------------------------------------------------------
# Wrapper
# ----------------------------------------------------------------------------
def multi_head_attention(q, k, v, mask, params, *, n_head, d_k, d_v):
    """q, k, v: (B, L, d_model) f32.  mask: (B, Lq, Lk), nonzero == masked.

    Returns (out (B, Lq, d_model) f32, attn (n_head*B, Lq, Lk) bf16).
    """
    B, Lq, Dm = q.shape
    _, Lk, _ = k.shape
    _, Lv, _ = v.shape
    assert Lk == Lv, "len_k must equal len_v"

    # Weights: (in, out) layout, full width, bf16 (MXU inputs are bf16 anyway).
    wq = params["wq"].astype(jnp.bfloat16)          # (Dm, H*dk)
    wk = params["wk"].astype(jnp.bfloat16)
    wv = params["wv"].astype(jnp.bfloat16)          # (Dm, H*dv)
    wfc = params["w_fc"].astype(jnp.bfloat16)       # (H*dv, Dm)
    bq, bk_, bv_ = params["bq"], params["bk"], params["bv"]
    b_fc, ln_g, ln_b = params["b_fc"], params["ln_g"], params["ln_b"]

    # K/V activations as bf16 (halved DMA); Q stays f32 (needed for residual).
    k_bf = k.astype(jnp.bfloat16)
    v_bf = v.astype(jnp.bfloat16)
    mask_i8 = (mask > 0).astype(jnp.int8)           # 4x smaller than f32

    try:
        vmem_cap = int(pltpu.get_tpu_info().vmem_capacity_bytes)
    except Exception:
        vmem_cap = 64 * 1024 * 1024                 # conservative (v7x per-core)
    vmem_limit = min(int(vmem_cap * 0.8), 100 * 1024 * 1024)
    bt, lqt = _pick_tiles(B, Lq, Lk, Dm, n_head, d_k, d_v,
                          budget=int(vmem_limit * 0.85))
    grid = (B // bt, Lq // lqt)

    inv_scale = 1.0 / float(np.power(d_k, 0.5))
    kernel = functools.partial(_fused_mha_kernel, n_head=n_head, d_k=d_k,
                               d_v=d_v, inv_scale=inv_scale, eps=1e-5)

    out, attn4 = pl.pallas_call(
        kernel,
        out_shape=(jax.ShapeDtypeStruct((B, Lq, Dm), jnp.float32),
                   # attention probs written in bf16 (halves the dominant HBM
                   # writeback; cast outside only if f32 parity is required).
                   jax.ShapeDtypeStruct((n_head, B, Lq, Lk), jnp.bfloat16)),
        grid_spec=pltpu.PrefetchScalarGridSpec(
            num_scalar_prefetch=0,
            grid=grid,
            in_specs=[
                pl.BlockSpec((bt, lqt, Dm), lambda b, l: (b, l, 0)),    # q (+residual)
                pl.BlockSpec((bt, Lk, Dm), lambda b, l: (b, 0, 0)),     # k (bf16)
                pl.BlockSpec((bt, Lk, Dm), lambda b, l: (b, 0, 0)),     # v (bf16)
                pl.BlockSpec((bt, lqt, Lk), lambda b, l: (b, l, 0)),    # mask (int8)
                pl.BlockSpec((Dm, n_head * d_k), lambda b, l: (0, 0)),  # wq
                pl.BlockSpec((1, n_head * d_k), lambda b, l: (0, 0)),   # bq
                pl.BlockSpec((Dm, n_head * d_k), lambda b, l: (0, 0)),  # wk
                pl.BlockSpec((1, n_head * d_k), lambda b, l: (0, 0)),   # bk
                pl.BlockSpec((Dm, n_head * d_v), lambda b, l: (0, 0)),  # wv
                pl.BlockSpec((1, n_head * d_v), lambda b, l: (0, 0)),   # bv
                pl.BlockSpec((n_head * d_v, Dm), lambda b, l: (0, 0)),  # w_fc
                pl.BlockSpec((1, Dm), lambda b, l: (0, 0)),             # b_fc
                pl.BlockSpec((1, Dm), lambda b, l: (0, 0)),             # ln gamma
                pl.BlockSpec((1, Dm), lambda b, l: (0, 0)),             # ln beta
            ],
            out_specs=[
                pl.BlockSpec((bt, lqt, Dm), lambda b, l: (b, l, 0)),
                pl.BlockSpec((n_head, bt, lqt, Lk), lambda b, l: (0, b, l, 0)),
            ],
            scratch_shapes=[pltpu.VMEM((bt * lqt, n_head * d_v), jnp.bfloat16)]),
        compiler_params=pltpu.CompilerParams(
            dimension_semantics=("parallel", "parallel"),
            vmem_limit_bytes=int(vmem_limit)),
    )(q, k_bf, v_bf, mask_i8,
      wq, bq, wk, bk_, wv, bv_, wfc, b_fc, ln_g, ln_b)

    # PyTorch attn shape: (n_head * sz_b, len_q, len_k) — head-major.
    attn = attn4.reshape(n_head * B, Lq, Lk)
    return out, attn


def init_params(key, *, d_model, n_head, d_k, d_v):
    """Deterministic parameter init mirroring the PyTorch __init__."""
    ks = jax.random.split(key, 8)
    std_qk = np.sqrt(2.0 / (d_model + d_k))
    std_v = np.sqrt(2.0 / (d_model + d_v))
    # PyTorch Linear stores W as (out, in); kernel uses (in, out) => transpose.
    wq = (jax.random.normal(ks[0], (n_head * d_k, d_model)) * std_qk).T
    wk = (jax.random.normal(ks[1], (n_head * d_k, d_model)) * std_qk).T
    wv = (jax.random.normal(ks[2], (n_head * d_v, d_model)) * std_v).T
    bnd = 1.0 / np.sqrt(d_model)
    bq = jax.random.uniform(ks[3], (1, n_head * d_k), minval=-bnd, maxval=bnd)
    bk = jax.random.uniform(ks[4], (1, n_head * d_k), minval=-bnd, maxval=bnd)
    bv = jax.random.uniform(ks[5], (1, n_head * d_v), minval=-bnd, maxval=bnd)
    std_fc = np.sqrt(2.0 / (n_head * d_v + d_model))
    w_fc = (jax.random.normal(ks[6], (d_model, n_head * d_v)) * std_fc).T
    bnd_fc = 1.0 / np.sqrt(n_head * d_v)
    b_fc = jax.random.uniform(ks[7], (1, d_model), minval=-bnd_fc, maxval=bnd_fc)
    ln_g = jnp.ones((1, d_model), jnp.float32)
    ln_b = jnp.zeros((1, d_model), jnp.float32)
    return dict(wq=wq.astype(jnp.float32), bq=bq.astype(jnp.float32),
                wk=wk.astype(jnp.float32), bk=bk.astype(jnp.float32),
                wv=wv.astype(jnp.float32), bv=bv.astype(jnp.float32),
                w_fc=w_fc.astype(jnp.float32), b_fc=b_fc.astype(jnp.float32),
                ln_g=ln_g, ln_b=ln_b)


def _reference(q, k, v, mask, params, *, n_head, d_k, d_v):
    """Pure-JAX f32 port of the PyTorch forward (loose numerical check)."""
    B, Lq, _ = q.shape
    qp = q @ params["wq"] + params["bq"]
    kp = k @ params["wk"] + params["bk"]
    vp = v @ params["wv"] + params["bv"]
    q4 = qp.reshape(B, Lq, n_head, d_k).transpose(2, 0, 1, 3).reshape(n_head * B, Lq, d_k)
    k4 = kp.reshape(B, -1, n_head, d_k).transpose(2, 0, 1, 3).reshape(n_head * B, -1, d_k)
    v4 = vp.reshape(B, -1, n_head, d_v).transpose(2, 0, 1, 3).reshape(n_head * B, -1, d_v)
    maskr = jnp.tile(mask, (n_head, 1, 1))
    scores = jnp.einsum('bqd,bkd->bqk', q4, k4) / np.sqrt(d_k)
    scores = jnp.where(maskr > 0, -1e30, scores)
    attn = jax.nn.softmax(scores, axis=-1)
    out = jnp.einsum('bqk,bkd->bqd', attn, v4)
    out = out.reshape(n_head, B, Lq, d_v).transpose(1, 2, 0, 3).reshape(B, Lq, n_head * d_v)
    out = out @ params["w_fc"] + params["b_fc"] + q
    mean = out.mean(-1, keepdims=True)
    var = ((out - mean) ** 2).mean(-1, keepdims=True)
    out = (out - mean) / jnp.sqrt(var + 1e-5) * params["ln_g"] + params["ln_b"]
    return out, attn


if __name__ == "__main__":
    # Small config consistent with the module's structure.
    n_head, d_model, d_k, d_v = 2, 32, 16, 16
    B, L = 2, 8

    key = jax.random.PRNGKey(0)
    kp_, kq, kk, kv = jax.random.split(key, 4)
    params = init_params(kp_, d_model=d_model, n_head=n_head, d_k=d_k, d_v=d_v)

    q = jax.random.normal(kq, (B, L, d_model), jnp.float32)
    k = jax.random.normal(kk, (B, L, d_model), jnp.float32)
    v = jax.random.normal(kv, (B, L, d_model), jnp.float32)

    # mask: 1.0 = masked (masked_fill semantics). Pad out last 2 keys of batch 1.
    mask_np = np.zeros((B, L, L), np.float32)
    mask_np[1, :, -2:] = 1.0
    mask = jnp.asarray(mask_np)

    out, attn = multi_head_attention(q, k, v, mask, params,
                                     n_head=n_head, d_k=d_k, d_v=d_v)
    jax.block_until_ready((out, attn))

    assert out.shape == (B, L, d_model)
    assert attn.shape == (n_head * B, L, L)
    out_np = np.asarray(out)
    attn_f32 = np.asarray(attn).astype(np.float32)
    assert np.isfinite(out_np).all()
    # softmax rows sum to ~1 (approx reciprocal + bf16 storage -> loose tol)
    assert np.allclose(attn_f32.sum(-1), 1.0, atol=3e-2)
    # masked keys carry (near-)zero probability
    assert attn_f32.reshape(n_head, B, L, L)[:, 1, :, -2:].max() < 1e-6

    # Loose check vs a pure-JAX f32 reference (kernel uses bf16 matmul inputs).
    ref_out, ref_attn = _reference(q, k, v, mask, params,
                                   n_head=n_head, d_k=d_k, d_v=d_v)
    assert np.allclose(out_np, np.asarray(ref_out), atol=0.15, rtol=0.15)
    assert np.allclose(attn_f32, np.asarray(ref_attn), atol=0.06)

    print("KERNEL_OK")
</pallas_src>

<mosaic_0001>
module attributes {stable_mosaic.version = 11 : i64} {
  func.func @_fused_mha_kernel(%arg0: i32, %arg1: i32, %arg2: memref<1x8x32xf32, #tpu.memory_space<vmem>>, %arg3: memref<1x8x32xbf16, #tpu.memory_space<vmem>>, %arg4: memref<1x8x32xbf16, #tpu.memory_space<vmem>>, %arg5: memref<1x8x8xi8, #tpu.memory_space<vmem>>, %arg6: memref<32x32xbf16, #tpu.memory_space<vmem>>, %arg7: memref<1x32xf32, #tpu.memory_space<vmem>>, %arg8: memref<32x32xbf16, #tpu.memory_space<vmem>>, %arg9: memref<1x32xf32, #tpu.memory_space<vmem>>, %arg10: memref<32x32xbf16, #tpu.memory_space<vmem>>, %arg11: memref<1x32xf32, #tpu.memory_space<vmem>>, %arg12: memref<32x32xbf16, #tpu.memory_space<vmem>>, %arg13: memref<1x32xf32, #tpu.memory_space<vmem>>, %arg14: memref<1x32xf32, #tpu.memory_space<vmem>>, %arg15: memref<1x32xf32, #tpu.memory_space<vmem>>, %arg16: memref<1x8x32xf32, #tpu.memory_space<vmem>>, %arg17: memref<2x1x8x8xbf16, #tpu.memory_space<vmem>>, %arg18: memref<8x32xbf16, #tpu.memory_space<vmem>>) attributes {dimension_semantics = [#tpu.dimension_semantics<parallel>, #tpu.dimension_semantics<parallel>], iteration_bounds = array<i64: 2, 1>, scalar_prefetch = 0 : i64, scratch_operands = 1 : i64, tpu.core_type = #tpu.core_type<tc>, window_params = [{transform_indices = @transform_0, window_bounds = array<i64: 1, 8, 32>}, {transform_indices = @transform_1, window_bounds = array<i64: 1, 8, 32>}, {transform_indices = @transform_2, window_bounds = array<i64: 1, 8, 32>}, {transform_indices = @transform_3, window_bounds = array<i64: 1, 8, 8>}, {pipeline_mode = #tpu.pipeline_mode<synchronous>, transform_indices = @transform_4, window_bounds = array<i64: 32, 32>}, {pipeline_mode = #tpu.pipeline_mode<synchronous>, transform_indices = @transform_5, window_bounds = array<i64: 1, 32>}, {pipeline_mode = #tpu.pipeline_mode<synchronous>, transform_indices = @transform_6, window_bounds = array<i64: 32, 32>}, {pipeline_mode = #tpu.pipeline_mode<synchronous>, transform_indices = @transform_7, window_bounds = array<i64: 1, 32>}, {pipeline_mode = #tpu.pipeline_mode<synchronous>, transform_indices = @transform_8, window_bounds = array<i64: 32, 32>}, {pipeline_mode = #tpu.pipeline_mode<synchronous>, transform_indices = @transform_9, window_bounds = array<i64: 1, 32>}, {pipeline_mode = #tpu.pipeline_mode<synchronous>, transform_indices = @transform_10, window_bounds = array<i64: 32, 32>}, {pipeline_mode = #tpu.pipeline_mode<synchronous>, transform_indices = @transform_11, window_bounds = array<i64: 1, 32>}, {pipeline_mode = #tpu.pipeline_mode<synchronous>, transform_indices = @transform_12, window_bounds = array<i64: 1, 32>}, {pipeline_mode = #tpu.pipeline_mode<synchronous>, transform_indices = @transform_13, window_bounds = array<i64: 1, 32>}, {transform_indices = @transform_14, window_bounds = array<i64: 1, 8, 32>}, {transform_indices = @transform_15, window_bounds = array<i64: 2, 1, 8, 8>}]} {
    %c0 = arith.constant 0 : index
    %c0_0 = arith.constant 0 : index
    %c0_1 = arith.constant 0 : index
    %0 = vector.load %arg2[%c0, %c0_0, %c0_1] : memref<1x8x32xf32, #tpu.memory_space<vmem>>, vector<1x8x32xf32>
    %1 = vector.shape_cast %0 : vector<1x8x32xf32> to vector<8x32xf32>
    %2 = arith.truncf %1 : vector<8x32xf32> to vector<8x32xbf16>
    %c0_2 = arith.constant 0 : index
    %c0_3 = arith.constant 0 : index
    %c0_4 = arith.constant 0 : index
    %3 = vector.load %arg3[%c0_2, %c0_3, %c0_4] : memref<1x8x32xbf16, #tpu.memory_space<vmem>>, vector<1x8x32xbf16>
    %4 = vector.shape_cast %3 : vector<1x8x32xbf16> to vector<8x32xbf16>
    %c0_5 = arith.constant 0 : index
    %c0_6 = arith.constant 0 : index
    %c0_7 = arith.constant 0 : index
    %5 = vector.load %arg4[%c0_5, %c0_6, %c0_7] : memref<1x8x32xbf16, #tpu.memory_space<vmem>>, vector<1x8x32xbf16>
    %6 = vector.shape_cast %5 : vector<1x8x32xbf16> to vector<8x32xbf16>
    %c0_8 = arith.constant 0 : index
    %c0_9 = arith.constant 0 : index
    %7 = vector.load %arg6[%c0_8, %c0_9] : memref<32x32xbf16, #tpu.memory_space<vmem>>, vector<32x32xbf16>
    %cst = arith.constant dense<0.000000e+00> : vector<8x32xf32>
    %8 = tpu.matmul %2, %7, %cst {dimension_numbers = #tpu.dot_dimension_numbers<[1], [0], [0], [1], [0, 0, 1, 1], [], []>} : vector<8x32xbf16>, vector<32x32xbf16>, vector<8x32xf32> -> vector<8x32xf32>
    %c0_10 = arith.constant 0 : index
    %c0_11 = arith.constant 0 : index
    %9 = vector.load %arg7[%c0_10, %c0_11] : memref<1x32xf32, #tpu.memory_space<vmem>>, vector<1x32xf32>
    %10 = vector.broadcast %9 : vector<1x32xf32> to vector<8x32xf32>
    %11 = arith.addf %8, %10 : vector<8x32xf32>
    %cst_12 = arith.constant 2.500000e-01 : f32
    %12 = vector.broadcast %cst_12 : f32 to vector<8x32xf32>
    %13 = arith.mulf %11, %12 : vector<8x32xf32>
    %c0_13 = arith.constant 0 : index
    %c0_14 = arith.constant 0 : index
    %14 = vector.load %arg8[%c0_13, %c0_14] : memref<32x32xbf16, #tpu.memory_space<vmem>>, vector<32x32xbf16>
    %cst_15 = arith.constant dense<0.000000e+00> : vector<8x32xf32>
    %15 = tpu.matmul %4, %14, %cst_15 {dimension_numbers = #tpu.dot_dimension_numbers<[1], [0], [0], [1], [0, 0, 1, 1], [], []>} : vector<8x32xbf16>, vector<32x32xbf16>, vector<8x32xf32> -> vector<8x32xf32>
    %c0_16 = arith.constant 0 : index
    %c0_17 = arith.constant 0 : index
    %16 = vector.load %arg9[%c0_16, %c0_17] : memref<1x32xf32, #tpu.memory_space<vmem>>, vector<1x32xf32>
    %17 = vector.broadcast %16 : vector<1x32xf32> to vector<8x32xf32>
    %18 = arith.addf %15, %17 : vector<8x32xf32>
    %c0_18 = arith.constant 0 : index
    %c0_19 = arith.constant 0 : index
    %19 = vector.load %arg10[%c0_18, %c0_19] : memref<32x32xbf16, #tpu.memory_space<vmem>>, vector<32x32xbf16>
    %cst_20 = arith.constant dense<0.000000e+00> : vector<8x32xf32>
    %20 = tpu.matmul %6, %19, %cst_20 {dimension_numbers = #tpu.dot_dimension_numbers<[1], [0], [0], [1], [0, 0, 1, 1], [], []>} : vector<8x32xbf16>, vector<32x32xbf16>, vector<8x32xf32> -> vector<8x32xf32>
    %c0_21 = arith.constant 0 : index
    %c0_22 = arith.constant 0 : index
    %21 = vector.load %arg11[%c0_21, %c0_22] : memref<1x32xf32, #tpu.memory_space<vmem>>, vector<1x32xf32>
    %22 = vector.broadcast %21 : vector<1x32xf32> to vector<8x32xf32>
    %23 = arith.addf %20, %22 : vector<8x32xf32>
    %24 = arith.truncf %13 : vector<8x32xf32> to vector<8x32xbf16>
    %25 = arith.truncf %18 : vector<8x32xf32> to vector<8x32xbf16>
    %26 = arith.truncf %23 : vector<8x32xf32> to vector<8x32xbf16>
    %c0_23 = arith.constant 0 : index
    %c0_24 = arith.constant 0 : index
    %c0_25 = arith.constant 0 : index
    %27 = vector.load %arg5[%c0_23, %c0_24, %c0_25] : memref<1x8x8xi8, #tpu.memory_space<vmem>>, vector<1x8x8xi8>
    %28 = arith.sitofp %27 : vector<1x8x8xi8> to vector<1x8x8xf32>
    %cst_26 = arith.constant 0.000000e+00 : f32
    %29 = vector.broadcast %cst_26 : f32 to vector<1x8x8xf32>
    %30 = arith.cmpf one, %28, %29 : vector<1x8x8xf32>
    %31 = vector.extract_strided_slice %24 {offsets = [0, 0], sizes = [8, 16], strides = [1, 1]} : vector<8x32xbf16> to vector<8x16xbf16>
    %32 = vector.shape_cast %31 : vector<8x16xbf16> to vector<1x8x16xbf16>
    %33 = vector.extract_strided_slice %25 {offsets = [0, 0], sizes = [8, 16], strides = [1, 1]} : vector<8x32xbf16> to vector<8x16xbf16>
    %34 = vector.shape_cast %33 : vector<8x16xbf16> to vector<1x8x16xbf16>
    %35 = vector.extract_strided_slice %26 {offsets = [0, 0], sizes = [8, 16], strides = [1, 1]} : vector<8x32xbf16> to vector<8x16xbf16>
    %36 = vector.shape_cast %35 : vector<8x16xbf16> to vector<1x8x16xbf16>
    "tpu.trace_start"() <{level = 10 : i32, message = "bqd,bkd->bqk"}> : () -> ()
    %cst_27 = arith.constant dense<0.000000e+00> : vector<1x8x8xf32>
    %37 = tpu.matmul %32, %34, %cst_27 {dimension_numbers = #tpu.dot_dimension_numbers<[2], [2], [1], [1], [0, 0, 0, 1, 1, 1], [0], [0]>} : vector<1x8x16xbf16>, vector<1x8x16xbf16>, vector<1x8x8xf32> -> vector<1x8x8xf32>
    %cst_28 = arith.constant -1.000000e+30 : f32
    "tpu.trace_stop"() : () -> ()
    %38 = vector.broadcast %cst_28 : f32 to vector<1x8x8xf32>
    %39 = arith.select %30, %38, %37 : vector<1x8x8xi1>, vector<1x8x8xf32>
    %cst_29 = arith.constant dense<0xFF800000> : vector<1x8xf32>
    %40 = vector.multi_reduction <maximumf>, %39, %cst_29 [2] : vector<1x8x8xf32> to vector<1x8xf32>
    %41 = vector.shape_cast %40 : vector<1x8xf32> to vector<1x8x1xf32>
    %42 = vector.broadcast %41 : vector<1x8x1xf32> to vector<1x8x8xf32>
    %43 = arith.subf %39, %42 : vector<1x8x8xf32>
    %44 = math.exp %43 : vector<1x8x8xf32>
    %cst_30 = arith.constant dense<0.000000e+00> : vector<1x8xf32>
    %45 = vector.multi_reduction <add>, %44, %cst_30 [2] : vector<1x8x8xf32> to vector<1x8xf32>
    %46 = vector.shape_cast %45 : vector<1x8xf32> to vector<1x8x1xf32>
    %47 = tpu.reciprocal %46 {approx = true} : vector<1x8x1xf32> -> vector<1x8x1xf32>
    %48 = vector.broadcast %47 : vector<1x8x1xf32> to vector<1x8x8xf32>
    %49 = arith.mulf %44, %48 : vector<1x8x8xf32>
    %50 = arith.truncf %49 : vector<1x8x8xf32> to vector<1x8x8xbf16>
    %c0_31 = arith.constant 0 : index
    %c0_32 = arith.constant 0 : index
    %c0_33 = arith.constant 0 : index
    %c0_34 = arith.constant 0 : index
    %51 = vector.load %arg17[%c0_31, %c0_32, %c0_33, %c0_34] : memref<2x1x8x8xbf16, #tpu.memory_space<vmem>>, vector<1x1x8x8xbf16>
    %52 = vector.shape_cast %51 : vector<1x1x8x8xbf16> to vector<1x8x8xbf16>
    %53 = vector.shape_cast %50 : vector<1x8x8xbf16> to vector<1x1x8x8xbf16>
    tpu.vector_store %arg17[%c0_31, %c0_32, %c0_33, %c0_34], %53 {strides = array<i32>} : memref<2x1x8x8xbf16, #tpu.memory_space<vmem>>, vector<1x1x8x8xbf16>,
    "tpu.trace_start"() <{level = 10 : i32, message = "bqk,bkd->bqd"}> : () -> ()
    %cst_35 = arith.constant dense<0.000000e+00> : vector<1x8x16xf32>
    %54 = tpu.matmul %50, %36, %cst_35 {dimension_numbers = #tpu.dot_dimension_numbers<[2], [1], [1], [2], [0, 0, 0, 1, 1, 2], [0], [0]>} : vector<1x8x8xbf16>, vector<1x8x16xbf16>, vector<1x8x16xf32> -> vector<1x8x16xf32>
    "tpu.trace_stop"() : () -> ()
    %55 = vector.shape_cast %54 : vector<1x8x16xf32> to vector<8x16xf32>
    %56 = arith.truncf %55 : vector<8x16xf32> to vector<8x16xbf16>
    %c0_36 = arith.constant 0 : index
    %c0_37 = arith.constant 0 : index
    %57 = vector.load %arg18[%c0_36, %c0_37] : memref<8x32xbf16, #tpu.memory_space<vmem>>, vector<8x16xbf16>
    tpu.vector_store %arg18[%c0_36, %c0_37], %56 {strides = array<i32>} : memref<8x32xbf16, #tpu.memory_space<vmem>>, vector<8x16xbf16>,
    %58 = vector.extract_strided_slice %24 {offsets = [0, 16], sizes = [8, 16], strides = [1, 1]} : vector<8x32xbf16> to vector<8x16xbf16>
    %59 = vector.shape_cast %58 : vector<8x16xbf16> to vector<1x8x16xbf16>
    %60 = vector.extract_strided_slice %25 {offsets = [0, 16], sizes = [8, 16], strides = [1, 1]} : vector<8x32xbf16> to vector<8x16xbf16>
    %61 = vector.shape_cast %60 : vector<8x16xbf16> to vector<1x8x16xbf16>
    %62 = vector.extract_strided_slice %26 {offsets = [0, 16], sizes = [8, 16], strides = [1, 1]} : vector<8x32xbf16> to vector<8x16xbf16>
    %63 = vector.shape_cast %62 : vector<8x16xbf16> to vector<1x8x16xbf16>
    "tpu.trace_start"() <{level = 10 : i32, message = "bqd,bkd->bqk"}> : () -> ()
    %cst_38 = arith.constant dense<0.000000e+00> : vector<1x8x8xf32>
    %64 = tpu.matmul %59, %61, %cst_38 {dimension_numbers = #tpu.dot_dimension_numbers<[2], [2], [1], [1], [0, 0, 0, 1, 1, 1], [0], [0]>} : vector<1x8x16xbf16>, vector<1x8x16xbf16>, vector<1x8x8xf32> -> vector<1x8x8xf32>
    %cst_39 = arith.constant -1.000000e+30 : f32
    "tpu.trace_stop"() : () -> ()
    %65 = vector.broadcast %cst_39 : f32 to vector<1x8x8xf32>
    %66 = arith.select %30, %65, %64 : vector<1x8x8xi1>, vector<1x8x8xf32>
    %cst_40 = arith.constant dense<0xFF800000> : vector<1x8xf32>
    %67 = vector.multi_reduction <maximumf>, %66, %cst_40 [2] : vector<1x8x8xf32> to vector<1x8xf32>
    %68 = vector.shape_cast %67 : vector<1x8xf32> to vector<1x8x1xf32>
    %69 = vector.broadcast %68 : vector<1x8x1xf32> to vector<1x8x8xf32>
    %70 = arith.subf %66, %69 : vector<1x8x8xf32>
    %71 = math.exp %70 : vector<1x8x8xf32>
    %cst_41 = arith.constant dense<0.000000e+00> : vector<1x8xf32>
    %72 = vector.multi_reduction <add>, %71, %cst_41 [2] : vector<1x8x8xf32> to vector<1x8xf32>
    %73 = vector.shape_cast %72 : vector<1x8xf32> to vector<1x8x1xf32>
    %74 = tpu.reciprocal %73 {approx = true} : vector<1x8x1xf32> -> vector<1x8x1xf32>
    %75 = vector.broadcast %74 : vector<1x8x1xf32> to vector<1x8x8xf32>
    %76 = arith.mulf %71, %75 : vector<1x8x8xf32>
    %77 = arith.truncf %76 : vector<1x8x8xf32> to vector<1x8x8xbf16>
    %c1 = arith.constant 1 : index
    %c0_42 = arith.constant 0 : index
    %c0_43 = arith.constant 0 : index
    %c0_44 = arith.constant 0 : index
    %78 = vector.load %arg17[%c1, %c0_42, %c0_43, %c0_44] : memref<2x1x8x8xbf16, #tpu.memory_space<vmem>>, vector<1x1x8x8xbf16>
    %79 = vector.shape_cast %78 : vector<1x1x8x8xbf16> to vector<1x8x8xbf16>
    %80 = vector.shape_cast %77 : vector<1x8x8xbf16> to vector<1x1x8x8xbf16>
    tpu.vector_store %arg17[%c1, %c0_42, %c0_43, %c0_44], %80 {strides = array<i32>} : memref<2x1x8x8xbf16, #tpu.memory_space<vmem>>, vector<1x1x8x8xbf16>,
    "tpu.trace_start"() <{level = 10 : i32, message = "bqk,bkd->bqd"}> : () -> ()
    %cst_45 = arith.constant dense<0.000000e+00> : vector<1x8x16xf32>
    %81 = tpu.matmul %77, %63, %cst_45 {dimension_numbers = #tpu.dot_dimension_numbers<[2], [1], [1], [2], [0, 0, 0, 1, 1, 2], [0], [0]>} : vector<1x8x8xbf16>, vector<1x8x16xbf16>, vector<1x8x16xf32> -> vector<1x8x16xf32>
    "tpu.trace_stop"() : () -> ()
    %82 = vector.shape_cast %81 : vector<1x8x16xf32> to vector<8x16xf32>
    %83 = arith.truncf %82 : vector<8x16xf32> to vector<8x16xbf16>
    %c0_46 = arith.constant 0 : index
    %c16 = arith.constant 16 : index
    %84 = vector.load %arg18[%c0_46, %c16] : memref<8x32xbf16, #tpu.memory_space<vmem>>, vector<8x16xbf16>
    tpu.vector_store %arg18[%c0_46, %c16], %83 {strides = array<i32>} : memref<8x32xbf16, #tpu.memory_space<vmem>>, vector<8x16xbf16>,
    %c0_47 = arith.constant 0 : index
    %c0_48 = arith.constant 0 : index
    %85 = vector.load %arg18[%c0_47, %c0_48] : memref<8x32xbf16, #tpu.memory_space<vmem>>, vector<8x32xbf16>
    %c0_49 = arith.constant 0 : index
    %c0_50 = arith.constant 0 : index
    %86 = vector.load %arg12[%c0_49, %c0_50] : memref<32x32xbf16, #tpu.memory_space<vmem>>, vector<32x32xbf16>
    %cst_51 = arith.constant dense<0.000000e+00> : vector<8x32xf32>
    %87 = tpu.matmul %85, %86, %cst_51 {dimension_numbers = #tpu.dot_dimension_numbers<[1], [0], [0], [1], [0, 0, 1, 1], [], []>} : vector<8x32xbf16>, vector<32x32xbf16>, vector<8x32xf32> -> vector<8x32xf32>
    %88 = vector.shape_cast %87 : vector<8x32xf32> to vector<1x8x32xf32>
    %c0_52 = arith.constant 0 : index
    %c0_53 = arith.constant 0 : index
    %89 = vector.load %arg13[%c0_52, %c0_53] : memref<1x32xf32, #tpu.memory_space<vmem>>, vector<1x32xf32>
    %90 = vector.shape_cast %89 : vector<1x32xf32> to vector<1x1x32xf32>
    %91 = vector.broadcast %90 : vector<1x1x32xf32> to vector<1x8x32xf32>
    %92 = arith.addf %88, %91 : vector<1x8x32xf32>
    %93 = arith.addf %92, %0 : vector<1x8x32xf32>
    %cst_54 = arith.constant dense<0.000000e+00> : vector<1x8xf32>
    %94 = vector.multi_reduction <add>, %93, %cst_54 [2] : vector<1x8x32xf32> to vector<1x8xf32>
    %95 = vector.shape_cast %94 : vector<1x8xf32> to vector<1x8x1xf32>
    %cst_55 = arith.constant 3.200000e+01 : f32
    %96 = vector.broadcast %cst_55 : f32 to vector<1x8x1xf32>
    %97 = arith.divf %95, %96 : vector<1x8x1xf32>
    %98 = vector.broadcast %97 : vector<1x8x1xf32> to vector<1x8x32xf32>
    %99 = arith.subf %93, %98 : vector<1x8x32xf32>
    %100 = arith.mulf %99, %99 : vector<1x8x32xf32>
    %cst_56 = arith.constant dense<0.000000e+00> : vector<1x8xf32>
    %101 = vector.multi_reduction <add>, %100, %cst_56 [2] : vector<1x8x32xf32> to vector<1x8xf32>
    %102 = vector.shape_cast %101 : vector<1x8xf32> to vector<1x8x1xf32>
    %cst_57 = arith.constant 3.200000e+01 : f32
    %103 = vector.broadcast %cst_57 : f32 to vector<1x8x1xf32>
    %104 = arith.divf %102, %103 : vector<1x8x1xf32>
    %105 = vector.broadcast %97 : vector<1x8x1xf32> to vector<1x8x32xf32>
    %106 = arith.subf %93, %105 : vector<1x8x32xf32>
    %cst_58 = arith.constant 9.99999974E-6 : f32
    %107 = vector.broadcast %cst_58 : f32 to vector<1x8x1xf32>
    %108 = arith.addf %104, %107 : vector<1x8x1xf32>
    %109 = math.rsqrt %108 : vector<1x8x1xf32>
    %110 = vector.broadcast %109 : vector<1x8x1xf32> to vector<1x8x32xf32>
    %111 = arith.mulf %106, %110 : vector<1x8x32xf32>
    %c0_59 = arith.constant 0 : index
    %c0_60 = arith.constant 0 : index
    %112 = vector.load %arg14[%c0_59, %c0_60] : memref<1x32xf32, #tpu.memory_space<vmem>>, vector<1x32xf32>
    %113 = vector.shape_cast %112 : vector<1x32xf32> to vector<1x1x32xf32>
    %114 = vector.broadcast %113 : vector<1x1x32xf32> to vector<1x8x32xf32>
    %115 = arith.mulf %111, %114 : vector<1x8x32xf32>
    %c0_61 = arith.constant 0 : index
    %c0_62 = arith.constant 0 : index
    %116 = vector.load %arg15[%c0_61, %c0_62] : memref<1x32xf32, #tpu.memory_space<vmem>>, vector<1x32xf32>
    %117 = vector.shape_cast %116 : vector<1x32xf32> to vector<1x1x32xf32>
    %118 = vector.broadcast %117 : vector<1x1x32xf32> to vector<1x8x32xf32>
    %119 = arith.addf %115, %118 : vector<1x8x32xf32>
    %c0_63 = arith.constant 0 : index
    %c0_64 = arith.constant 0 : index
    %c0_65 = arith.constant 0 : index
    %120 = vector.load %arg16[%c0_63, %c0_64, %c0_65] : memref<1x8x32xf32, #tpu.memory_space<vmem>>, vector<1x8x32xf32>
    tpu.vector_store %arg16[%c0_63, %c0_64, %c0_65], %119 {strides = array<i32>} : memref<1x8x32xf32, #tpu.memory_space<vmem>>, vector<1x8x32xf32>,
    return
  }
  func.func @transform_0(%arg0: i32, %arg1: i32) -> (i32, i32, i32) {
    %c0_i32 = arith.constant 0 : i32
    %c0_i32_0 = arith.constant 0 : i32
    return %arg0, %arg1, %c0_i32 : i32, i32, i32
  }
  func.func @transform_1(%arg0: i32, %arg1: i32) -> (i32, i32, i32) {
    %c0_i32 = arith.constant 0 : i32
    %c0_i32_0 = arith.constant 0 : i32
    %c0_i32_1 = arith.constant 0 : i32
    return %arg0, %c0_i32, %c0_i32_0 : i32, i32, i32
  }
  func.func @transform_2(%arg0: i32, %arg1: i32) -> (i32, i32, i32) {
    %c0_i32 = arith.constant 0 : i32
    %c0_i32_0 = arith.constant 0 : i32
    %c0_i32_1 = arith.constant 0 : i32
    return %arg0, %c0_i32, %c0_i32_0 : i32, i32, i32
  }
  func.func @transform_3(%arg0: i32, %arg1: i32) -> (i32, i32, i32) {
    %c0_i32 = arith.constant 0 : i32
    %c0_i32_0 = arith.constant 0 : i32
    return %arg0, %arg1, %c0_i32 : i32, i32, i32
  }
  func.func @transform_4(%arg0: i32, %arg1: i32) -> (i32, i32) {
    %c0_i32 = arith.constant 0 : i32
    %c0_i32_0 = arith.constant 0 : i32
    %c0_i32_1 = arith.constant 0 : i32
    return %c0_i32, %c0_i32_0 : i32, i32
  }
  func.func @transform_5(%arg0: i32, %arg1: i32) -> (i32, i32) {
    %c0_i32 = arith.constant 0 : i32
    %c0_i32_0 = arith.constant 0 : i32
    %c0_i32_1 = arith.constant 0 : i32
    return %c0_i32, %c0_i32_0 : i32, i32
  }
  func.func @transform_6(%arg0: i32, %arg1: i32) -> (i32, i32) {
    %c0_i32 = arith.constant 0 : i32
    %c0_i32_0 = arith.constant 0 : i32
    %c0_i32_1 = arith.constant 0 : i32
    return %c0_i32, %c0_i32_0 : i32, i32
  }
  func.func @transform_7(%arg0: i32, %arg1: i32) -> (i32, i32) {
    %c0_i32 = arith.constant 0 : i32
    %c0_i32_0 = arith.constant 0 : i32
    %c0_i32_1 = arith.constant 0 : i32
    return %c0_i32, %c0_i32_0 : i32, i32
  }
  func.func @transform_8(%arg0: i32, %arg1: i32) -> (i32, i32) {
    %c0_i32 = arith.constant 0 : i32
    %c0_i32_0 = arith.constant 0 : i32
    %c0_i32_1 = arith.constant 0 : i32
    return %c0_i32, %c0_i32_0 : i32, i32
  }
  func.func @transform_9(%arg0: i32, %arg1: i32) -> (i32, i32) {
    %c0_i32 = arith.constant 0 : i32
    %c0_i32_0 = arith.constant 0 : i32
    %c0_i32_1 = arith.constant 0 : i32
    return %c0_i32, %c0_i32_0 : i32, i32
  }
  func.func @transform_10(%arg0: i32, %arg1: i32) -> (i32, i32) {
    %c0_i32 = arith.constant 0 : i32
    %c0_i32_0 = arith.constant 0 : i32
    %c0_i32_1 = arith.constant 0 : i32
    return %c0_i32, %c0_i32_0 : i32, i32
  }
  func.func @transform_11(%arg0: i32, %arg1: i32) -> (i32, i32) {
    %c0_i32 = arith.constant 0 : i32
    %c0_i32_0 = arith.constant 0 : i32
    %c0_i32_1 = arith.constant 0 : i32
    return %c0_i32, %c0_i32_0 : i32, i32
  }
  func.func @transform_12(%arg0: i32, %arg1: i32) -> (i32, i32) {
    %c0_i32 = arith.constant 0 : i32
    %c0_i32_0 = arith.constant 0 : i32
    %c0_i32_1 = arith.constant 0 : i32
    return %c0_i32, %c0_i32_0 : i32, i32
  }
  func.func @transform_13(%arg0: i32, %arg1: i32) -> (i32, i32) {
    %c0_i32 = arith.constant 0 : i32
    %c0_i32_0 = arith.constant 0 : i32
    %c0_i32_1 = arith.constant 0 : i32
    return %c0_i32, %c0_i32_0 : i32, i32
  }
  func.func @transform_14(%arg0: i32, %arg1: i32) -> (i32, i32, i32) {
    %c0_i32 = arith.constant 0 : i32
    %c0_i32_0 = arith.constant 0 : i32
    return %arg0, %arg1, %c0_i32 : i32, i32, i32
  }
  func.func @transform_15(%arg0: i32, %arg1: i32) -> (i32, i32, i32, i32) {
    %c0_i32 = arith.constant 0 : i32
    %c0_i32_0 = arith.constant 0 : i32
    %c0_i32_1 = arith.constant 0 : i32
    return %c0_i32, %arg0, %arg1, %c0_i32_0 : i32, i32, i32, i32
  }
}

</mosaic_0001>

<bundles_post_ra>
// kernel: tpu_custom_call.1
= control target key start
LH: loop header
LB: loop body
LE: loop exit
PB: predicated region body
PF: predicated region fallthrough
CT: control target
= control target key end

     0   :  { %s2326_s0 = inlined_call_operand.hbm [shape: f32[2,8,32], index: 0, kind: input, shape index: {}]   ;;  %s2327_s1 = inlined_call_operand.hbm [shape: bf16[2,8,32], index: 1, kind: input, shape index: {}]   ;;  %s2328_s2 = inlined_call_operand.hbm [shape: bf16[2,8,32], index: 2, kind: input, shape index: {}]   ;;  %s2329_s3 = inlined_call_operand.hbm [shape: s8[2,8,8], index: 3, kind: input, shape index: {}]   ;;  %s2330_s4 = inlined_call_operand.hbm [shape: bf16[32,32], index: 4, kind: input, shape index: {}]   ;;  %s2331_s5 = inlined_call_operand.vmem [shape: f32[1,32], index: 5, kind: input, shape index: {}]   ;;  %s2332_s6 = inlined_call_operand.hbm [shape: bf16[32,32], index: 6, kind: input, shape index: {}]   ;;  %s2333_s7 = inlined_call_operand.vmem [shape: f32[1,32], index: 7, kind: input, shape index: {}]   ;;  %s2334_s8 = inlined_call_operand.hbm [shape: bf16[32,32], index: 8, kind: input, shape index: {}]   ;;  %s2335_s9 = inlined_call_operand.vmem [shape: f32[1,32], index: 9, kind: input, shape index: {}]   ;;  %s2336_s10 = inlined_call_operand.hbm [shape: bf16[32,32], index: 10, kind: input, shape index: {}]   ;;  %s2337_s11 = inlined_call_operand.vmem [shape: f32[1,32], index: 11, kind: input, shape index: {}]   ;;  %s2338_s12 = inlined_call_operand.vmem [shape: f32[1,32], index: 12, kind: input, shape index: {}]   ;;  %s2339_s13 = inlined_call_operand.vmem [shape: f32[1,32], index: 13, kind: input, shape index: {}]   ;;  %s2340_s14 = inlined_call_operand.hbm [shape: f32[2,8,32], index: 14, kind: output, shape index: {0}]   ;;  %s2341_s15 = inlined_call_operand.hbm [shape: bf16[2,2,8,8], index: 15, kind: output, shape index: {1}]  }
   0x1   :  { %2357 = sst [smem:[#allocation35_spill]] %s2327_s1 }
   0x2   :  { %2358 = sst [smem:[#allocation36_spill]] %s2330_s4 }
   0x3   :  { %2359 = sst [smem:[#allocation37_spill]] %s2331_s5 }
   0x4   :  { %2360 = sst [smem:[#allocation38_spill]] %s2332_s6 }
   0x5   :  { %2361 = sst [smem:[#allocation39_spill]] %s2333_s7 }
   0x6   :  { %2362 = sst [smem:[#allocation40_spill]] %s2335_s9 }
   0x7   :  { %2363 = sst [smem:[#allocation41_spill]] %s2337_s11 }
   0x8   :  { %2364 = sst [smem:[#allocation42_spill]] %s2338_s12 }
   0x9   :  { %2365 = sst [smem:[#allocation43_spill]] %s2339_s13 }
   0xa   :  { %2366 = sst [smem:[#allocation44_spill]] %s2340_s14 }
   0xb   :  { %2367 = sst [smem:[#allocation45_spill]] %s2341_s15 }
   0xc   :  { %21 = vsyncpa [#allocation4], 0 }
   0xd   :  { %23 = vsyncpa [#allocation4 + $0x1], 0 }
   0xe   :  { %24 = vsyncpa [#allocation7], 0 }
   0xf   :  { %26 = vsyncpa [#allocation7 + $0x1], 0 }
  0x10   :  { %27 = vsyncpa [#allocation10], 0 }
  0x11   :  { %29 = vsyncpa [#allocation10 + $0x1], 0 }
  0x12   :  { %30 = vsyncpa [#allocation13], 0 }
  0x13   :  { %31 = vsyncpa [#allocation16], 0 }
  0x14   :  { %32 = vsyncpa [#allocation5], 0 }
  0x15   :  { %34 = vsyncpa [#allocation5 + $0x1], 0 }
  0x16   :  { %35 = vsyncpa [#allocation19], 0 }
  0x17   :  { %37 = vsyncpa [#allocation19 + $0x1], 0  ;;  %s2017_s18 = smov 0   ;;  %s2019_s19 = smov 0  }
  0x18   :  { %s2021_s20 = smov 0   ;;  %s2023_s21 = smov 0  }
  0x19   :  { %s2025_s22 = smov 0   ;;  %s2027_s23 = smov 0  }
  0x1a LB: > { %2368 = sst [smem:[#allocation28_spill]] %s1903_s18  ;;  %s2048_s24 = sadd.s32 4294967295, %s1923_s23   ;;  %s1923_s23 = sphi %s2027_s23, %s43_s23   ;;  %s1919_s22 = sphi %s2025_s22, %s2407_s22   ;;  %s1915_s21 = sphi %s2023_s21, %s2406_s21   ;;  %s1911_s20 = sphi %s2021_s20, %s2402_s20   ;;  %s1907_s19 = sphi %s2019_s19, %s2405_s19   ;;  %s1903_s18 = sphi %s2017_s18, %s2404_s18  }
  0x1b   : > { %2369 = sst [smem:[#allocation29_spill]] %s1911_s20  ;;  %s1319_s25 = sadd.s32 4294967294, %s1923_s23  }
  0x1c   : > { %2370 = sst [smem:[#allocation30_spill]] %s1915_s21  ;;  %p77_p0 = scmp.ne.s32.totalorder %s1907_s19, %s1903_s18 }
  0x1d   : > { %p78_p1 = scmp.eq.s32.totalorder %s2048_s24, 0  ;;  %p393_p2 = scmp.eq.s32.totalorder %s2048_s24, 1 }
  0x1e   : > { %p399_p3 = scmp.eq.s32.totalorder %s1319_s25, 1  ;;  %p1320_p5 = scmp.ge.s32.totalorder %s1923_s23, 1 }
  0x1f   : > { %p2057_p4 = por %p78_p1, %p77_p0  ;;  %p434_p7 = scmp.lt.s32.totalorder %s1923_s23, 3 }
  0x20   : > { %p2062_p6 = por %p399_p3, %p77_p0  ;;  %s2374_s4 = sld [smem:[#allocation36_spill]] }
  0x21   : > { %p2070_p8 = pnand %p1320_p5, %p434_p7  ;;  %s1925_s17 = smov [#allocation11]  }
  0x22   : > { %s2372_s27 = scalar_select %p2062_p6, 1, 0 }
  0x23   : > { %p1428_p9 = pneg %p2070_p8  ;;  %s447_s25 = sshll.u32 %s1925_s17, 4  ;;  %s448_s25 = int_to_ptr.vmem [resolvable:$true] %s447_s25 }
  0x24   : > { %2373 = sst [smem:[#allocation31_spill]] %s2372_s27  ;;  %s2345_s17 = smov 64  }
  0x25   : > { %p2078_p10 = pnand %p1428_p9, %p78_p1  ;;  %s2377_s6 = sld [smem:[#allocation38_spill]] }
  0x26   : > { %s445_s30 = sshll.u32 %s2374_s4, 4  ;;  %s2347_s18 = smov 4   ;;  %s446_s30 = int_to_ptr.hbm [resolvable:$true] %s445_s30 }
  0x27   : > { %1431 = dma.hbm_to_vmem [thread:$0]  (!%p2078_p10), %s446_s30, 256, %s448_s25, [#allocation10], %s2345_s17, %s2345_s17, %s2347_s18  }
  0x28   : > { %s1928_s13 = smov [#allocation12]   ;;  %s55_s4 = sadd.s32 1, %s1919_s22 }
  0x29   : > { %s464_s14 = sshll.u32 %s1928_s13, 4  ;;  %s64_s29 = sadd.s32 1, %s1911_s20  ;;  %s465_s14 = int_to_ptr.vmem [resolvable:$true] %s464_s14 }
  0x2a   : > { %p57_p12 = scmp.ge.s32.totalorder %s55_s4, 2  ;;  %p71_p13 = scmp.ne.s32.totalorder %s1911_s20, %s1907_s19 }
  0x2b   : > { %s462_s27 = sshll.u32 %s2377_s6, 4  ;;  %p72_p0 = scmp.eq.s32.totalorder %s1923_s23, 0  ;;  %s463_s27 = int_to_ptr.hbm [resolvable:$true] %s462_s27 }
  0x2c   : > { %1434 = dma.hbm_to_vmem [thread:$0]  (!%p2078_p10), %s463_s27, 256, %s465_s14, [#allocation13], %s2345_s17, %s2345_s17, %s2347_s18  }
  0x2d   : > { %p1465_p3 = scmp.lt.s32.totalorder %s1923_s23, 2  ;;  %s2409_s4 = smov (%p57_p12, %s55_s4), 0 }
  0x2e   : > { %2378 = sst [smem:[#allocation32_spill]] %s2409_s4  ;;  %p73_p5 = por %p72_p0, %p71_p13 }
  0x2f   : > { %p2106_p7 = por %p393_p2, %p71_p13  ;;  %s59_s30 = ssub.s32 %s1919_s22, %s2409_s4 }
  0x30   : > { %s2113_s14 = sand.u32 1, %s1911_s20   ;;  %p62_p9 = scmp.eq.s32.totalorder %s59_s30, 0 }
  0x31   : > { %s2379_s13 = scalar_select %p2106_p7, 1, 0 }
  0x32   : > { %p2115_p11 = pnand %p1465_p3, %p73_p5  ;;  %s2356_s25 = sand.u32 1, %s1923_s23  }
  0x33   : > { %2380 = sst [smem:[#allocation33_spill]] %s2379_s13  ;;  %s2354_s17 = sshll.u32 %s2113_s14, 2 }
  0x34   : > { %s2122_s18 = scalar_select %p62_p9, %s1911_s20, %s64_s29  }
  0x35   : > { %s1329_s6 = sshll.u32 %s1919_s22, 2  ;;  %s2383_s1 = sld [smem:[#allocation35_spill]] }
  0x36   : > { %2382 = sst [smem:[#allocation34_spill]] %s2122_s18  ;;  %s545_s13 = scalar_lea.vmem [#allocation6], %s2354_s17 }
  0x37   : > { %s553_s21 = sshll.u32 %s545_s13, 4  ;;  %s2132_s30 = scalar_lea.sflag [#allocation7], %s2356_s25  ;;  %s554_s21 = int_to_ptr.vmem [resolvable:$true] %s553_s21 }
  0x38   : > { %s568_s12 = scalar_lea.hbm %s2328_s2, %s1329_s6  ;;  %s479_s13 = sshll.u32 %s2334_s8, 4  ;;  %s480_s13 = int_to_ptr.hbm [resolvable:$true] %s479_s13 }
  0x39   : > { %s496_s25 = sshll.u32 %s2336_s10, 4  ;;  %s2384_s7 = smov 4   ;;  %s497_s25 = int_to_ptr.hbm [resolvable:$true] %s496_s25 }
  0x3a   : > { %s2385_s5 = smov 64   ;;  %s1327_s9 = sshll.u32 %s1919_s22, 3 }
  0x3b   : > { %s549_s4 = scalar_lea.hbm %s2383_s1, %s1329_s6  ;;  %s1930_s6 = smov [#allocation15]  }
  0x3c   : > { %s551_s11 = sshll.u32 %s549_s4, 4  ;;  %s1929_s4 = smov [#allocation14]   ;;  %s552_s11 = int_to_ptr.hbm [resolvable:$true] %s551_s11 }
  0x3d   : > { %1447 = dma.hbm_to_vmem [thread:$0]  (!%p2115_p11), %s552_s11, 64, %s554_s21, %s2132_s30  }
  0x3e   : > { %s481_s17 = sshll.u32 %s1929_s4, 4  ;;  %s498_s1 = sshll.u32 %s1930_s6, 4  ;;  %s482_s17 = int_to_ptr.vmem [resolvable:$true] %s481_s17  ;;  %s499_s1 = int_to_ptr.vmem [resolvable:$true] %s498_s1 }
  0x3f   : > { %1437 = dma.hbm_to_vmem [thread:$0]  (!%p2078_p10), %s480_s13, 256, %s482_s17, [#allocation13], %s2385_s5, %s2385_s5, %s2384_s7  }
  0x40   : > { %s1326_s11 = sshll.u32 %s2113_s14, 3  ;;  %s530_s21 = scalar_lea.hbm %s2326_s0, %s1327_s9 }
  0x41   : > { %1440 = dma.hbm_to_vmem [thread:$0]  (!%p2078_p10), %s497_s25, 256, %s499_s1, [#allocation16], %s2385_s5, %s2385_s5, %s2384_s7  }
  0x42   : > { %s525_s17 = scalar_lea.vmem [#allocation3], %s1326_s11  ;;  %s532_s15 = sshll.u32 %s530_s21, 4  ;;  %s533_s15 = int_to_ptr.hbm [resolvable:$true] %s532_s15 }
  0x43   : > { %s534_s29 = sshll.u32 %s525_s17, 4  ;;  %s570_s13 = sshll.u32 %s568_s12, 4  ;;  %s535_s29 = int_to_ptr.vmem [resolvable:$true] %s534_s29  ;;  %s571_s13 = int_to_ptr.hbm [resolvable:$true] %s570_s13 }
  0x44   : > { %s522_s28 = scalar_lea.sflag [#allocation4], %s2113_s14  ;;  %s2386_s5 = sshll.u32 %s2113_s14, 2 }
  0x45   : > { %1444 = dma.hbm_to_vmem [thread:$0]  (!%p2115_p11), %s533_s15, 128, %s535_s29, %s522_s28  }
  0x46   : > { %s564_s7 = scalar_lea.vmem [#allocation8], %s2386_s5  ;;  %s1332_s4 = sshll.u32 %s2113_s14, 1 }
  0x47   : > { %s572_s25 = sshll.u32 %s564_s7, 4  ;;  %s1333_s6 = sshll.u32 %s1919_s22, 1  ;;  %s573_s25 = int_to_ptr.vmem [resolvable:$true] %s572_s25 }
  0x48   : > { %1450 = dma.hbm_to_vmem [thread:$0]  (!%p2115_p11), %s571_s13, 64, %s573_s25, %s2132_s30  }
  0x49   : > { %s588_s9 = scalar_lea.hbm %s2329_s3, %s1333_s6  ;;  %s583_s18 = scalar_lea.vmem [#allocation9], %s1332_s4 }
  0x4a   : > { %s592_s12 = sshll.u32 %s583_s18, 4  ;;  %s590_s20 = sshll.u32 %s588_s9, 4  ;;  %s593_s12 = int_to_ptr.vmem [resolvable:$true] %s592_s12  ;;  %s591_s20 = int_to_ptr.hbm [resolvable:$true] %s590_s20 }
  0x4b   : > { %s2387_s21 = sand.u32 1, %s1923_s23   ;;  %601 = sbr.rel (%p2070_p8) target bundleno = 1406 (0x57e), region = 76 }
  0x4c   : > { %s580_s17 = scalar_lea.sflag [#allocation10], %s2387_s21  ;;  %s2181_s14 = sand.u32 (!%p2070_p8), 1, %s1907_s19  }
  0x4d   : > { %1453 = dma.hbm_to_vmem [thread:$0]  (!%p2115_p11), %s591_s20, 32, %s593_s12, %s580_s17  }
  0x4e   : > { %s2184_s30 = sshll.u32 (!%p2070_p8), %s2181_s14, 3  ;;  %s604_s29 = scalar_lea.sflag (!%p2070_p8), [#allocation4], %s2181_s14 }
  0x4f   : > { %s607_s15 = scalar_lea.vmem (!%p2070_p8), [#allocation3], %s2184_s30 }
  0x50   : > { %1870 = dma.done.wait (%p2057_p4), %s604_s29, 128  }
  0x51   : > { %1872 = vsyncadd (%p2057_p4), %s604_s29, 4294967168  ;;  %s613_s16 = sand.u32 1, %s2048_s24   ;;  %s1336_s27 = sshll.u32 %s2181_s14, 2 }
  0x52   : > { %s614_s13 = scalar_lea.sflag [#allocation7], %s613_s16  ;;  %s617_s28 = scalar_lea.vmem [#allocation6], %s1336_s27 }
  0x53   : > { %1874 = dma.done.wait (%p2057_p4), %s614_s13, 128  }
  0x54   : > { %1876 = vsyncadd (%p2057_p4), %s614_s13, 4294967168  ;;  %s1338_s5 = sshll.u32 %s2181_s14, 1  ;;  %s2199_s7 = scalar_lea.vmem [#allocation8], %s1336_s27 }
  0x55   : > { %s634_s25 = scalar_lea.sflag [#allocation10], %s613_s16  ;;  %s2201_s4 = scalar_lea.vmem [#allocation9], %s1338_s5 }
  0x56   : > { %1878 = dma.done.wait (%p2057_p4), %s634_s25, 32  }
  0x57   : > { %1880 = vsyncadd (%p2057_p4), %s634_s25, 4294967264 }
  0x58   : > { %1882 = dma.done.wait (%p78_p1), [#allocation10], 256  }
  0x59   : > { %1884 = vsyncadd (%p78_p1), [#allocation10], 4294967040 }
  0x5a   : > { %1886 = dma.done.wait (%p78_p1), [#allocation13], 512  }
  0x5b   : > { %1888 = vsyncadd (%p78_p1), [#allocation13], 4294966784 }
  0x5c   : > { %1890 = dma.done.wait (%p78_p1), [#allocation16], 256  }
  0x5d   : > { %1892 = vsyncadd (%p78_p1), [#allocation16], 4294967040  ;;  %v1393_v0 = vld [vmem:[#allocation11 + $0x8] sm:$0xff]  ;;  %v1395_v1 = vld [vmem:[#allocation12 + $0x8] sm:$0xff]  ;;  %vm750_vm0 = vcmask 261120   ;;  %s2388_s6 = sld [smem:[#allocation37_spill]] }
  0x5e   : > { %v1392_v2 = vld [vmem:[#allocation11] sm:$0xff]  ;;  %v1394_v3 = vld [vmem:[#allocation12] sm:$0xff]  ;;  %760 = vmatpush.bf16.msra.mxu0 %v1393_v0  ;;  %797 = vmatpush.bf16.msra.mxu1 %v1395_v1  ;;  %s2389_s9 = sld [smem:[#allocation39_spill]]  ;;  %vm847_vm1 = vcmask 130048   ;;  %s1931_s18 = smov 112   ;;  %v1397_v28 = vld [vmem:[#allocation14 + $0x8] sm:$0xff] }
  0x5f   : > { %v2219_v4 = vld [vmem:[%s607_s15] sm:$0xff]  ;;  %v728_v6 = vld [vmem:[%s617_s28] sm:$0xf]  ;;  %833 = vmatpush.bf16.msra.mxu2 %v1397_v28  ;;  %v729_v30 = vld [vmem:[%s2199_s7] sm:$0xf]  ;;  %vm868_vm3 = vcmask 64512  }
  0x60   : > { %v727_v5 = vpack.c.bf16 %v2219_v4, %v2219_v4  ;;  %v1396_v29 = vld [vmem:[#allocation14] sm:$0xff]  ;;  %v843_v31 = vld [vmem:[%s2201_s4] sm:$0x3]  ;;  %s2390_s21 = sld [smem:[#allocation40_spill]]  ;;  %vm886_vm4 = vcmask 1043456   ;;  %vm881_vm5 = vcmask 60416  }
  0x61   : > { %v844_v32 = vunpack.c.0.s8 %v843_v31  ;;  %s2251_s17 = scalar_lea.vmem [#allocation18], %s2184_s30  ;;  %vm904_vm6 = vcmask 125952   ;;  %s1932_s29 = smov 16   ;;  %vm979_vm7 = vcmask 257152  }
  0x62   : > { %761 = vmatpush.bf16.msra.mxu0 %v1392_v2  ;;  %798 = vmatpush.bf16.msra.mxu1 %v1394_v3  ;;  %s2391_s27 = sld [smem:[#allocation41_spill]]  ;;  %s1093_s26 = sshll.u32 %s2251_s17, 4  ;;  %s1094_s26 = int_to_ptr.vmem [resolvable:$true] %s1093_s26 }
  0x63   : > { %v1531_v7 = vld [vmem:[%s2388_s6] ss:$0 sm:$0xff]  ;;  %834 = vmatpush.bf16.msra.mxu2 %v1396_v29  ;;  %v845_v33 = vcvt.s32.f32 %v844_v32  ;;  %s2392_s13 = sld [smem:[#allocation30_spill]]  ;;  %s1066_s1 = scalar_lea.sflag [#allocation19], %s2181_s14 }
  0x64   : > { %v1532_v8 = vld [vmem:[%s2389_s9] ss:$0 sm:$0xff]  ;;  %s2394_s4 = sld [smem:[#allocation45_spill]] }
  0x65   : > { %1353 = vmatmul.msk.bf16.vlgmr.msra.gmra.mxu0 %vm750_vm0, %v727_v5  ;;  %1362 = vmatmul.msk.bf16.vlgmr.msra.gmra.mxu1 %vm750_vm0, %v728_v6  ;;  %vm846_vm2 = vcmp.ne.f32.partialorder %v845_v33, 0.0 }
  0x66   : > { %1371 = vmatmul.msk.bf16.vlgmr.msra.gmra.mxu2 %vm750_vm0, %v729_v30  ;;  %v1533_v40 = vld [vmem:[%s2390_s21] ss:$0 sm:$0xff] }
  0x69   : > { %s1389_s5 = sshll.u32 %s2392_s13, 2 }
  0x6a   : > { %s1092_s24 = scalar_lea.hbm %s2394_s4, %s1389_s5  ;;  %s1809_s20 = scalar_lea.hbm %s2394_s4, 16 }
  0x6b   : > { %s1095_s6 = sshll.u32 %s1092_s24, 4  ;;  %s1096_s6 = int_to_ptr.hbm [resolvable:$true] %s1095_s6 }
  0x6c   : > { %s1803_s11 = sshra.s32 %s1096_s6, 4  ;;  %s1804_s11 = int_to_ptr.hbm [resolvable:$true] %s1803_s11 }
  0x6d   : > { %s1805_s9 = scalar_lea.hbm %s1804_s11, 8  ;;  %p1810_p8 = scmp.lt.s32.totalorder %s1804_s11, %s2394_s4 }
  0x6e   : > { %p1806_p1 = scmp.ne.s32.totalorder %s1804_s11, %s1805_s9  ;;  %p1811_p10 = scmp.lt.s32.totalorder %s1809_s20, %s1805_s9 }
  0x70   : > { %p1807_p2 = pnand %p1806_p1, %p2106_p7  ;;  %p1812_p11 = por %p1811_p10, %p1810_p8 }
  0x72   : > { %p1808_p4 = pneg %p1807_p2 }
  0x74   : > { %p1813_p12 = pnand %p1812_p11, %p1808_p4 }
  0xe2   : > { %v763_v9 = vpop.f32.mrf.mxu0  ;;  %v800_v10 = vpop.f32.mrf.mxu1 }
  0xe3   : > { %v764_v11 = vadd.f32 %v1531_v7, %v763_v9  ;;  %v801_v12 = vadd.f32 %v1532_v8, %v800_v10 }
  0xe5   : > { %v767_v13 = vmul.f32 0.25, %v764_v11  ;;  %v841_v14 = vpack.c.bf16 %v801_v12, %v801_v12  ;;  %v1399_v11 = vld [vmem:[#allocation15 + $0x8] sm:$0xff]  ;;  %v1398_v12 = vld [vmem:[#allocation15] sm:$0xff] }
  0xe7   : > { %v840_v15 = vpack.c.bf16 %v767_v13, %v767_v13  ;;  %v852_v16 = vsel %vm847_vm1, %v841_v14, 0  ;;  %v912_v17 = vunpack.c.l.b16 %v841_v14 }
  0xe8   : > { %861 = vmatpush.bf16.xpose.msra.mxu3 %v852_v16 }
  0xe9   : > { %v913_v18 = vpack.c.b16 %v912_v17, %v912_v17  ;;  %v907_v21 = vunpack.c.l.b16 %v840_v15  ;;  %v836_v41 = vpop.f32.mrf.mxu2 }
  0xea   : > { %v765_v19 = vpop.f32.mrf.mxu0  ;;  %v802_v20 = vpop.f32.mrf.mxu1  ;;  %v837_v42 = vadd.f32 %v1533_v40, %v836_v41 }
  0xeb   : > { %914 = vrot.lane.b32.xlu0 %v913_v18, %s1931_s18  ;;  %v908_v22 = vpack.c.b16 %v907_v21, %v907_v21  ;;  %v1933_v21 = vmov 32.0  }
  0xec   : > { %v842_v44 = vpack.c.bf16 %v837_v42, %v837_v42 }
  0xee   : > { %v888_v46 = vsel %vm886_vm4, %v842_v44, 0  ;;  %v951_v56 = vunpack.c.l.b16 %v842_v44 }
  0xef   : > { %1372 = vmatmul.msk.bf16.vlgmr.msra.gmra.mxu3 %vm847_vm1, %v840_v15  ;;  %897 = vmatpush.bf16.msrb.mxu0 %v888_v46  ;;  %v1534_v15 = vld [vmem:[%s2391_s27] ss:$0 sm:$0xff] }
  0xf0   : > { %v952_v57 = vpack.c.b16 %v951_v56, %v951_v56  ;;  %1007 = vmatpush.bf16.msrb.mxu3 %v1399_v11 }
  0xf1   : > { %v838_v48 = vpop.f32.mrf.mxu2 }
  0xf3   : > { %909 = vrot.lane.b32.xlu0 %v908_v22, %s1931_s18 }
  0xf4   : > { %1008 = vmatpush.bf16.msrb.mxu3 %v1398_v12 }
 0x15d   : > { %v915_v23 = vpop.permute.xlu0 %914 }
 0x15e   : > { %v920_v24 = vsel %vm847_vm1, %v915_v23, 0 }
 0x15f   : > { %929 = vmatpush.bf16.xpose.msrb.mxu1 %v920_v24 }
 0x165   : > { %v910_v25 = vpop.permute.xlu0 %909 }
 0x166   : > { %1374 = vmatmul.msk.bf16.vlgmr.msrb.gmra.mxu1 %vm847_vm1, %v910_v25 }
 0x172   : > { %v863_v26 = vpop.f32.mrf.mxu3 }
 0x173   : > { %v867_v37 = vsel %vm846_vm2, -1e+30, %v863_v26 }
 0x174   : > { %v869_v39 = vsel %vm868_vm3, %v867_v37, -inf }
 0x17a   : > { %v865_v27 = vpop.f32.mrf.mxu3 }
 0x1e3   : > { %v931_v34 = vpop.f32.mrf.mxu1 }
 0x1e4   : > { %v935_v35 = vsel %vm846_vm2, -1e+30, %v931_v34 }
 0x1e5   : > { %v936_v36 = vsel %vm868_vm3, %v935_v35, -inf }
 0x1e6   : > { %937 = vmax.xlane.f32.xlu1 %v936_v36 }
 0x1eb   : > { %v933_v38 = vpop.f32.mrf.mxu1 }
 0x1ee   : > { %870 = vmax.xlane.f32.xlu1 %v869_v39 }
 0x259   : > { %v938_v43 = vpop.xlane.xlu1 %937 }
 0x25a   : > { %v939_v45 = vsub.f32 %v935_v35, %v938_v43 }
 0x25c   : > { %v940_v47 = vmul.f32 1.442695, %v939_v45 }
 0x25e   : > { %1537 = vpow2.f32 %v940_v47 }
 0x261   : > { %v871_v49 = vpop.xlane.xlu1 %870 }
 0x262   : > { %v872_v50 = vsub.f32 %v867_v37, %v871_v49 }
 0x264   : > { %v1538_v51 = vpop.eup %1537  ;;  %v873_v52 = vmul.f32 1.442695, %v872_v50 }
 0x265   : > { %v942_v53 = vsel %vm868_vm3, %v1538_v51, 0.0 }
 0x266   : > { %1539 = vpow2.f32 %v873_v52  ;;  %943 = vadd.xlane.f32.xlu2 %v942_v53 }
 0x26c   : > { %v1540_v54 = vpop.eup %1539 }
 0x26d   : > { %v875_v55 = vsel %vm868_vm3, %v1540_v54, 0.0 }
 0x26e   : > { %876 = vadd.xlane.f32.xlu0 %v875_v55 }
 0x27e   : > { %953 = vrot.lane.b32.xlu2 %v952_v57, %s1931_s18 }
 0x2d9   : > { %v944_v58 = vpop.xlane.xlu2 %943 }
 0x2da   : > { %1541 = vrcp.f32 %v944_v58 }
 0x2e0   : > { %v1542_v59 = vpop.eup %1541 }
 0x2e1   : > { %v946_v60 = vmul.f32 %v1542_v59, %v1538_v51  ;;  %v954_v61 = vpop.permute.xlu2 %953  ;;  %v877_v62 = vpop.xlane.xlu0 %876 }
 0x2e2   : > { %1543 = vrcp.f32 %v877_v62  ;;  %v959_v63 = vsel %vm886_vm4, %v954_v61, 0 }
 0x2e3   : > { %968 = vmatpush.bf16.msrb.mxu2 %v959_v63  ;;  %v947_v0 = vpack.c.bf16 %v946_v60, %v946_v60  ;;  %1545 = vrcp.f32 %v1933_v21 }
 0x2e5   : > { %1375 = vst.msk [vmem:[%s2251_s17 + $0x4] sm:$0xf] %vm881_vm5, %v947_v0 }
 0x2e6   : > { %1376 = vmatmul.msk.bf16.vlgmr.msrb.gmra.mxu2 %vm868_vm3, %v947_v0 }
 0x2e8   : > { %v1544_v1 = vpop.eup %1543 }
 0x2e9   : > { %v879_v2 = vmul.f32 %v1544_v1, %v1540_v54  ;;  %v1546_v22 = vpop.eup %1545 }
 0x2ea   : > { %v1024_v23 = vmul.f32 32.0, %v1546_v22  ;;  %vm1028_vm8 = vweird.f32 %v1546_v22 }
 0x2eb   : > { %v880_v3 = vpack.c.bf16 %v879_v2, %v879_v2 }
 0x2ec   : > { %v1025_v24 = vsub.f32 1.0, %v1024_v23 }
 0x2ed   : > { %882 = vst.msk [vmem:[%s2251_s17] sm:$0xf] %vm881_vm5, %v880_v3  ;;  %1373 = vmatmul.msk.bf16.vlgmr.msrb.gmra.mxu0 %vm868_vm3, %v880_v3 }
 0x2ee   : > { %v1026_v25 = vmul.f32 %v1546_v22, %v1025_v24 }
 0x2f0   : > { %v1027_v26 = vadd.f32 %v1546_v22, %v1026_v25 }
 0x2f2   : > { %v1029_v27 = vsel %vm1028_vm8, %v1546_v22, %v1027_v26 }
 0x369   : > { %v970_v5 = vpop.f32.mrf.mxu2 }
 0x36a   : > { %v974_v6 = vpack.c.bf16 %v970_v5, %v970_v5  ;;  %v899_v7 = vpop.f32.mrf.mxu0 }
 0x36b   : > { %v903_v8 = vpack.c.bf16 %v899_v7, %v899_v7 }
 0x36c   : > { %976 = vrot.lane.b32.xlu1 %v974_v6, %s1932_s29 }
 0x36d   : > { %905 = vst.msk [vmem:[#allocation2] sm:$0xf] %vm904_vm6, %v903_v8 }
 0x371   : > { %v972_v9 = vpop.f32.mrf.mxu2 }
 0x372   : > { %v901_v10 = vpop.f32.mrf.mxu0 }
 0x3de   : > { %v977_v13 = vpop.permute.xlu1 %976 }
 0x3df   : > { %980 = vst.msk [vmem:[#allocation2] sm:$0xf] %vm979_vm7, %v977_v13 }
 0x3e6   : > { %v981_v14 = vld [vmem:[#allocation2] sm:$0xf] }
 0x3e7   : > { %1385 = vmatmul.msk.bf16.vlgmr.msrb.gmra.mxu3 %vm750_vm0, %v981_v14 }
 0x46a   : > { %v1010_v16 = vpop.f32.mrf.mxu3 }
 0x46b   : > { %v1018_v17 = vadd.f32 %v1534_v15, %v1010_v16 }
 0x46d   : > { %v1019_v18 = vadd.f32 %v1018_v17, %v2219_v4 }
 0x46f   : > { %v1020_v19 = vsel %vm750_vm0, %v1019_v18, 0.0 }
 0x470   : > { %1021 = vadd.xlane.f32.xlu2 %v1020_v19 }
 0x472   : > { %v1012_v20 = vpop.f32.mrf.mxu3 }
 0x4e3   : > { %v1022_v28 = vpop.xlane.xlu2 %1021 }
 0x4e4   : > { %v1030_v29 = vmul.f32 %v1029_v27, %v1022_v28 }
 0x4e6   : > { %v1031_v4 = vsub.f32 %v1019_v18, %v1030_v29 }
 0x4e8   : > { %v1032_v30 = vmul.f32 %v1031_v4, %v1031_v4 }
 0x4ea   : > { %v1033_v31 = vsel %vm750_vm0, %v1032_v30, 0.0 }
 0x4eb   : > { %1034 = vadd.xlane.f32.xlu1 %v1033_v31 }
 0x4ec   : > { %1816 = shalt.err (!%p1813_p12)
}
 0x4ed   : > { %s1934_s17 = smov 64   ;;  %s1935_s15 = smov 128  }
 0x4ee   : > { %s1936_s16 = smov 4   ;;  %s1388_s27 = sshll.u32 %s2392_s13, 3 }
 0x4ef   : > { %1425 = dma.vmem_to_hbm [thread:$0]  (%p2106_p7), %s1094_s26, 128, %s1096_s6, %s1066_s1, %s1934_s17, %s1935_s15, %s1936_s16  }
 0x4f0   : > { %s2395_s25 = sld [smem:[#allocation42_spill]]  ;;  %s717_s13 = scalar_lea.vmem [#allocation17], %s2184_s30 }
 0x4f1   : > { %s2396_s6 = sld [smem:[#allocation44_spill]]  ;;  %s1079_s12 = sshll.u32 %s717_s13, 4  ;;  %s1080_s12 = int_to_ptr.vmem [resolvable:$true] %s1079_s12 }
 0x4f2   : > { %s2397_s18 = sld [smem:[#allocation43_spill]]  ;;  %s1061_s21 = scalar_lea.sflag [#allocation5], %s2181_s14 }
 0x4f6   : > { %v1535_v41 = vld [vmem:[%s2395_s25] ss:$0 sm:$0xff] }
 0x4f7   : > { %s1077_s1 = scalar_lea.hbm %s2396_s6, %s1388_s27  ;;  %s1837_s30 = scalar_lea.hbm %s2396_s6, 16 }
 0x4f8   : > { %v1536_v44 = vld [vmem:[%s2397_s18] ss:$0 sm:$0xff]  ;;  %s1081_s20 = sshll.u32 %s1077_s1, 4  ;;  %s1082_s20 = int_to_ptr.hbm [resolvable:$true] %s1081_s20 }
 0x4f9   : > { %s1831_s29 = sshra.s32 %s1082_s20, 4  ;;  %s1832_s29 = int_to_ptr.hbm [resolvable:$true] %s1831_s29 }
 0x4fa   : > { %s1833_s17 = scalar_lea.hbm %s1832_s29, 8  ;;  %p1838_p5 = scmp.lt.s32.totalorder %s1832_s29, %s2396_s6 }
 0x4fb   : > { %p1834_p13 = scmp.ne.s32.totalorder %s1832_s29, %s1833_s17  ;;  %p1839_p9 = scmp.lt.s32.totalorder %s1837_s30, %s1833_s17 }
 0x4fd   : > { %p1835_p0 = pnand %p1834_p13, %p2106_p7  ;;  %p1840_p1 = por %p1839_p9, %p1838_p5 }
 0x4ff   : > { %p1836_p3 = pneg %p1835_p0 }
 0x501   : > { %p1841_p2 = pnand %p1840_p1, %p1836_p3 }
 0x55e   : > { %v1035_v32 = vpop.xlane.xlu1 %1034 }
 0x55f   : > { %v1036_v33 = vmul.f32 %v1035_v32, %v1029_v27 }
 0x561   : > { %v1037_v34 = vadd.f32 1e-05, %v1036_v33 }
 0x563   : > { %1547 = vrsqrt.f32 %v1037_v34  ;;  %vm1044_vm10 = vweird.f32 %v1037_v34 }
 0x569   : > { %v1548_v35 = vpop.eup %1547 }
 0x56a   : > { %v1039_v36 = vmul.f32 %v1548_v35, %v1037_v34  ;;  %vm1045_vm9 = vweird.f32 %v1548_v35 }
 0x56b   : > { %vm1046_vm11 = vmor %vm1044_vm10, %vm1045_vm9 }
 0x56c   : > { %v1040_v37 = vmul.f32 %v1548_v35, %v1039_v36 }
 0x56e   : > { %v1041_v38 = vmul.f32 0.5, %v1040_v37 }
 0x570   : > { %v1042_v39 = vsub.f32 1.5, %v1041_v38 }
 0x572   : > { %v1043_v40 = vmul.f32 %v1548_v35, %v1042_v39 }
 0x574   : > { %v1047_v42 = vsel %vm1046_vm11, %v1548_v35, %v1043_v40 }
 0x575   : > { %v1048_v43 = vmul.f32 %v1047_v42, %v1031_v4 }
 0x577   : > { %v1053_v45 = vmul.f32 %v1535_v41, %v1048_v43 }
 0x579   : > { %v1058_v46 = vadd.f32 %v1536_v44, %v1053_v45 }
 0x57b   : > { %1059 = vst.msk [vmem:[%s717_s13] sm:$0xff] %vm750_vm0, %v1058_v46 }
 0x57c   : > { %1844 = shalt.err (!%p1841_p2)
}
 0x57d   : > { %1424 = dma.vmem_to_hbm [thread:$0]  (%p2106_p7), %s1080_s12, 128, %s1082_s20, %s1061_s21  }
 0x57e PF: > { %s2398_s14 = sld [smem:[#allocation28_spill]]  ;;  %p2400_p4 = scmp.ge.s32.totalorder %s1923_s23, 2 }
 0x580   : > { %p1455_p8 = pnand %p2400_p4, %p2062_p6 }
 0x582   : > { %p1456_p10 = pneg %p1455_p8 }
 0x584   : > { %s1110_s25 = sand.u32 1, %s2398_s14  }
 0x585   : > { %s1111_s24 = scalar_lea.sflag [#allocation5], %s1110_s25 }
 0x586   : > { %1894 = dma.done.wait (%p1456_p10), %s1111_s24, 128  }
 0x587   : > { %1896 = vsyncadd (%p1456_p10), %s1111_s24, 4294967168  ;;  %s1121_s26 = scalar_lea.sflag [#allocation19], %s1110_s25 }
 0x588   : > { %1898 = dma.done.wait (%p1456_p10), %s1121_s26, 128  }
 0x589   : > { %1900 = vsyncadd (%p1456_p10), %s1121_s26, 4294967168  ;;  %s43_s23 = sadd.s32 1, %s1923_s23   ;;  %s2401_s28 = sld [smem:[#allocation29_spill]] }
 0x58a   : > { %p40_p11 = scmp.ge.s32.totalorder %s43_s23, 4   ;;  %s2402_s20 = sld [smem:[#allocation34_spill]] }
 0x58b   : > { %s2403_s1 = sld [smem:[#allocation32_spill]]  ;;  %s2404_s18 = smov %s1907_s19 }
 0x58c   : > { %s2406_s21 = smov %s1919_s22 }
 0x58d   :  { %42 = sbr.rel (!%p40_p11) target bundleno = 26 (0x1a), region = 192 }
 0x58f   : > { %s2405_s19 = smov %s2401_s28 }
 0x591   : > { %s2407_s22 = smov %s2403_s1 }
 0x592   :  { %1127 = vsyncpa [#allocation4], 1 }
 0x593   :  { %1129 = vsyncpa [#allocation4 + $0x1], 1 }
 0x594   :  { %1130 = vsyncpa [#allocation7], 1 }
 0x595   :  { %1132 = vsyncpa [#allocation7 + $0x1], 1 }
 0x596   :  { %1133 = vsyncpa [#allocation10], 1 }
 0x597   :  { %1135 = vsyncpa [#allocation10 + $0x1], 1 }
 0x598   :  { %1136 = vsyncpa [#allocation13], 1 }
 0x599   :  { %1137 = vsyncpa [#allocation16], 1 }
 0x59a   :  { %1138 = vsyncpa [#allocation5], 1 }
 0x59b   :  { %1140 = vsyncpa [#allocation5 + $0x1], 1 }
 0x59c   :  { %1141 = vsyncpa [#allocation19], 1 }
 0x59d   :  { %1143 = vsyncpa [#allocation19 + $0x1], 1 }

</bundles_post_ra>
